<compile_context>
chip_gen: v7x
topology: tpu7x:2x2x1
jax: 0.10.0
libtpu: 0.0.40
codegen_flags: <defaults>
</compile_context>

<pallas_src>
import functools

import jax
import jax.numpy as jnp
from jax import lax
from jax.experimental import pallas as pl
from jax.experimental.pallas import tpu as pltpu

HIDDEN = 10

# Packed-parameter slab layout (rows x cols, f32, zero padded).
# All block starts are 8-sublane aligned so kernel slices never cross
# (8, 128) vreg tile boundaries.
#   rows  0:10 , cols 0:D   -> W1   (10, D)    (PyTorch layout: out x in)
#   rows 16:26 , cols 0:10  -> W2   (10, 10)
#   rows 32:42 , cols 0:10  -> W3   (10, 10)
#   rows 48:58 , col  0     -> W4^T (10, 1)    (final layer stored as a column)
#   rows 48:58 , col  1     -> b1   (10, 1)
#   rows 48:58 , col  2     -> b2   (10, 1)
#   rows 48:58 , col  3     -> b3   (10, 1)
#   row  48    , col  4     -> b4   (1, 1)
_R_W1, _R_W2, _R_W3, _R_TAIL = 0, 16, 32, 48
_SLAB_ROWS = 64


def _round_up(x, m):
    return ((x + m - 1) // m) * m


def _cdiv(a, b):
    return -(-a // b)


def _value_net_kernel(x_ref, p_ref, o_ref, *, state_dim):
    # x_ref: (TB, D)  -- x tile in its natural HBM layout (no wrapper copy).
    # p_ref: packed, sublane-aligned parameter slab, resident across all steps.
    # o_ref: (1, TB)  -- lane-dense output tile (unmasked stores).
    x = x_ref[...]
    p = p_ref[...]

    w1 = p[_R_W1:_R_W1 + 10, 0:state_dim]       # (10, D)
    w2 = p[_R_W2:_R_W2 + 10, 0:10]              # (10, 10)
    w3 = p[_R_W3:_R_W3 + 10, 0:10]              # (10, 10)
    w4 = p[_R_TAIL:_R_TAIL + 10, 0:1]           # (10, 1)
    b1 = p[_R_TAIL:_R_TAIL + 10, 1:2]           # (10, 1), broadcast over lanes
    b2 = p[_R_TAIL:_R_TAIL + 10, 2:3]
    b3 = p[_R_TAIL:_R_TAIL + 10, 3:4]
    b4 = p[_R_TAIL:_R_TAIL + 1, 4:5]            # (1, 1)

    # Layer 1: (10, D) contracted with (TB, D) on D (trans-B matmul, same
    # dimension_numbers as flash attention's q @ k^T).  Result is (10, TB):
    # batch lands on the 128-lane axis without an explicit transpose.
    h = lax.dot_general(w1, x, (((1,), (1,)), ((), ())),
                        preferred_element_type=jnp.float32)
    h = jnp.maximum(h + b1, 0.0)
    h = jnp.maximum(jnp.dot(w2, h, preferred_element_type=jnp.float32) + b2, 0.0)
    h = jnp.maximum(jnp.dot(w3, h, preferred_element_type=jnp.float32) + b3, 0.0)

    # Final 10 -> 1 layer: VPU broadcast-multiply + sublane (XLU) reduction
    # instead of a degenerate K=10 / N=1 MXU matmul.
    o_ref[...] = (jnp.sum(h * w4, axis=0, keepdims=True) + b4).astype(o_ref.dtype)


def pack_params(params, state_dim):
    """Pack all weights/biases into one zero-padded, sublane-aligned f32 slab.

    Call this ONCE per parameter update and pass the result to
    value_network_forward(..., packed_slab=slab) — not per forward call.
    """
    cols = _round_up(max(state_dim, HIDDEN, 8), 128)
    slab = jnp.zeros((_SLAB_ROWS, cols), jnp.float32)
    slab = slab.at[_R_W1:_R_W1 + 10, 0:state_dim].set(params["w1"].astype(jnp.float32))
    slab = slab.at[_R_W2:_R_W2 + 10, 0:10].set(params["w2"].astype(jnp.float32))
    slab = slab.at[_R_W3:_R_W3 + 10, 0:10].set(params["w3"].astype(jnp.float32))
    slab = slab.at[_R_TAIL:_R_TAIL + 10, 0:1].set(params["w4"].astype(jnp.float32).T)
    slab = slab.at[_R_TAIL:_R_TAIL + 10, 1:2].set(params["b1"].astype(jnp.float32).reshape(10, 1))
    slab = slab.at[_R_TAIL:_R_TAIL + 10, 2:3].set(params["b2"].astype(jnp.float32).reshape(10, 1))
    slab = slab.at[_R_TAIL:_R_TAIL + 10, 3:4].set(params["b3"].astype(jnp.float32).reshape(10, 1))
    slab = slab.at[_R_TAIL:_R_TAIL + 1, 4:5].set(params["b4"].astype(jnp.float32).reshape(1, 1))
    return slab


def _choose_tile_batch(batch, state_dim, block_batch):
    """Pick the batch tile size tb (multiple of 128) and the grid length."""
    batch128 = _round_up(batch, 128)
    # VMEM budget for the double-buffered x tile: 2 * tb * D * 4 B <= ~12 MiB
    # keeps the kernel inside every generation's default scoped VMEM
    # (v5e: 16 MiB, v6e/v7x: 32 MiB) without retuning.
    vmem_budget = 12 * 1024 * 1024
    tb_vmem = max(128, (vmem_budget // (2 * state_dim * 4)) // 128 * 128)
    # Prefer >= 2 grid steps when the batch allows it so the "parallel" grid
    # axis can shard across v7x's two TensorCores (no-op on v5e/v6e).
    tb_split = max(128, _round_up(_cdiv(batch128, 2), 128))
    tb = min(_round_up(block_batch, 128), batch128, tb_vmem, tb_split)
    num_tiles = _cdiv(batch, tb)
    return tb, num_tiles


def value_network_forward(x, params, *, packed_slab=None, block_batch=8192,
                          min_pallas_batch=512):
    """x: (batch, state_dim) f32. params: PyTorch-layout dict (w: (out,in), b: (out,)).

    Pass packed_slab=pack_params(params, state_dim) to hoist slab construction
    out of the per-forward path.
    """
    batch, state_dim = x.shape

    # Small-batch fast path: pallas_call dispatch overhead exceeds the whole
    # MLP cost at tiny batches; a fused XLA forward wins there.  (Also keeps
    # the Pallas path's batch tile <= the actual batch.)
    if batch < max(min_pallas_batch, 128):
        return reference_forward(x, params)

    slab = pack_params(params, state_dim) if packed_slab is None else packed_slab
    tb, num_tiles = _choose_tile_batch(batch, state_dim, block_batch)

    kernel = functools.partial(_value_net_kernel, state_dim=state_dim)
    out = pl.pallas_call(
        kernel,
        out_shape=jax.ShapeDtypeStruct((1, num_tiles * tb), jnp.float32),
        grid=(num_tiles,),
        in_specs=[
            # x streamed straight from its natural (batch, D) layout — no
            # wrapper-side transpose/pad copy.  The ragged tail block reads
            # undefined rows; columns never mix and the tail is sliced off.
            pl.BlockSpec((tb, state_dim), lambda i: (i, 0)),
            # Parameter slab: full array, constant index_map -> resident.
            pl.BlockSpec(slab.shape, lambda i: (0, 0)),
        ],
        out_specs=pl.BlockSpec((1, tb), lambda i: (0, i)),
        compiler_params=pltpu.CompilerParams(
            dimension_semantics=("parallel",)),
    )(x.astype(jnp.float32), slab)

    # Back to the PyTorch-facing (B, 1) contract.
    return out[0, :batch].reshape(batch, 1)


def init_params(state_dimension, key):
    """Deterministic PyTorch-style init. Weights (out, in), biases (out,)."""
    keys = jax.random.split(key, 8)

    def linear(kw, kb, fan_in, fan_out):
        bound = 1.0 / jnp.sqrt(jnp.float32(fan_in))
        w = jax.random.uniform(kw, (fan_out, fan_in), jnp.float32, -bound, bound)
        b = jax.random.uniform(kb, (fan_out,), jnp.float32, -bound, bound)
        return w, b

    w1, b1 = linear(keys[0], keys[1], state_dimension, HIDDEN)
    w2, b2 = linear(keys[2], keys[3], HIDDEN, HIDDEN)
    w3, b3 = linear(keys[4], keys[5], HIDDEN, HIDDEN)
    w4, b4 = linear(keys[6], keys[7], HIDDEN, 1)
    return {"w1": w1, "b1": b1, "w2": w2, "b2": b2,
            "w3": w3, "b3": b3, "w4": w4, "b4": b4}


def reference_forward(x, p):
    """Pure-JAX reference with PyTorch Linear semantics (y = x @ W.T + b)."""
    h = jnp.maximum(x @ p["w1"].T + p["b1"], 0.0)
    h = jnp.maximum(h @ p["w2"].T + p["b2"], 0.0)
    h = jnp.maximum(h @ p["w3"].T + p["b3"], 0.0)
    return h @ p["w4"].T + p["b4"]


if __name__ == "__main__":
    key = jax.random.PRNGKey(0)
    k_params, k_small, k_big = jax.random.split(key, 3)

    state_dimension = 32
    params = init_params(state_dimension, k_params)
    slab = pack_params(params, state_dimension)   # hoisted: once per param update

    # Small, tile-exact batch forced through the Pallas path (2 grid steps).
    x_small = jax.random.normal(k_small, (256, state_dimension), jnp.float32)
    out_small = jax.block_until_ready(
        value_network_forward(x_small, params, packed_slab=slab, min_pallas_batch=0))
    ref_small = reference_forward(x_small, params)
    assert out_small.shape == (256, 1), out_small.shape
    assert jnp.allclose(out_small, ref_small, atol=1e-4, rtol=1e-4), "mismatch (small batch)"

    # Larger, non-tile-aligned batch: >=2 grid steps (v7x TC split) and a
    # ragged tail block with no wrapper-side padding.
    x_big = jax.random.normal(k_big, (1000, state_dimension), jnp.float32)
    out_big = jax.block_until_ready(
        value_network_forward(x_big, params, packed_slab=slab))
    ref_big = reference_forward(x_big, params)
    assert out_big.shape == (1000, 1), out_big.shape
    assert jnp.allclose(out_big, ref_big, atol=1e-4, rtol=1e-4), "mismatch (large batch)"

    # Tiny batch exercises the fused-XLA small-batch fast path.
    x_tiny = jax.random.normal(jax.random.PRNGKey(1), (8, state_dimension), jnp.float32)
    out_tiny = jax.block_until_ready(value_network_forward(x_tiny, params))
    ref_tiny = reference_forward(x_tiny, params)
    assert out_tiny.shape == (8, 1), out_tiny.shape
    assert jnp.allclose(out_tiny, ref_tiny, atol=1e-4, rtol=1e-4), "mismatch (tiny batch)"

    print("KERNEL_OK")
</pallas_src>

<mosaic_0001>
module attributes {stable_mosaic.version = 11 : i64} {
  func.func @_value_net_kernel(%arg0: i32, %arg1: memref<128x32xf32, #tpu.memory_space<vmem>>, %arg2: memref<64x128xf32, #tpu.memory_space<vmem>>, %arg3: memref<1x128xf32, #tpu.memory_space<vmem>>) attributes {dimension_semantics = [#tpu.dimension_semantics<parallel>], iteration_bounds = array<i64: 2>, scalar_prefetch = 0 : i64, scratch_operands = 0 : i64, tpu.core_type = #tpu.core_type<tc>, window_params = [{transform_indices = @transform_0, window_bounds = array<i64: 128, 32>}, {pipeline_mode = #tpu.pipeline_mode<synchronous>, transform_indices = @transform_1, window_bounds = array<i64: 64, 128>}, {transform_indices = @transform_2, window_bounds = array<i64: 1, 128>}]} {
    %c0 = arith.constant 0 : index
    %c0_0 = arith.constant 0 : index
    %0 = vector.load %arg1[%c0, %c0_0] : memref<128x32xf32, #tpu.memory_space<vmem>>, vector<128x32xf32>
    %c0_1 = arith.constant 0 : index
    %c0_2 = arith.constant 0 : index
    %1 = vector.load %arg2[%c0_1, %c0_2] : memref<64x128xf32, #tpu.memory_space<vmem>>, vector<64x128xf32>
    %2 = vector.extract_strided_slice %1 {offsets = [0, 0], sizes = [10, 32], strides = [1, 1]} : vector<64x128xf32> to vector<10x32xf32>
    %3 = vector.extract_strided_slice %1 {offsets = [16, 0], sizes = [10, 10], strides = [1, 1]} : vector<64x128xf32> to vector<10x10xf32>
    %4 = vector.extract_strided_slice %1 {offsets = [32, 0], sizes = [10, 10], strides = [1, 1]} : vector<64x128xf32> to vector<10x10xf32>
    %5 = vector.extract_strided_slice %1 {offsets = [48, 0], sizes = [10, 1], strides = [1, 1]} : vector<64x128xf32> to vector<10x1xf32>
    %6 = vector.extract_strided_slice %1 {offsets = [48, 1], sizes = [10, 1], strides = [1, 1]} : vector<64x128xf32> to vector<10x1xf32>
    %7 = vector.extract_strided_slice %1 {offsets = [48, 2], sizes = [10, 1], strides = [1, 1]} : vector<64x128xf32> to vector<10x1xf32>
    %8 = vector.extract_strided_slice %1 {offsets = [48, 3], sizes = [10, 1], strides = [1, 1]} : vector<64x128xf32> to vector<10x1xf32>
    %9 = vector.extract_strided_slice %1 {offsets = [48, 4], sizes = [1, 1], strides = [1, 1]} : vector<64x128xf32> to vector<1x1xf32>
    %cst = arith.constant dense<0.000000e+00> : vector<10x128xf32>
    %10 = tpu.matmul %2, %0, %cst {dimension_numbers = #tpu.dot_dimension_numbers<[1], [1], [0], [0], [0, 0, 1, 0], [], []>} : vector<10x32xf32>, vector<128x32xf32>, vector<10x128xf32> -> vector<10x128xf32>
    %11 = vector.broadcast %6 : vector<10x1xf32> to vector<10x128xf32>
    %12 = arith.addf %10, %11 : vector<10x128xf32>
    %cst_3 = arith.constant 0.000000e+00 : f32
    %13 = vector.broadcast %cst_3 : f32 to vector<10x128xf32>
    %14 = arith.maximumf %12, %13 : vector<10x128xf32>
    %cst_4 = arith.constant dense<0.000000e+00> : vector<10x128xf32>
    %15 = tpu.matmul %3, %14, %cst_4 {dimension_numbers = #tpu.dot_dimension_numbers<[1], [0], [0], [1], [0, 0, 1, 1], [], []>} : vector<10x10xf32>, vector<10x128xf32>, vector<10x128xf32> -> vector<10x128xf32>
    %16 = vector.broadcast %7 : vector<10x1xf32> to vector<10x128xf32>
    %17 = arith.addf %15, %16 : vector<10x128xf32>
    %cst_5 = arith.constant 0.000000e+00 : f32
    %18 = vector.broadcast %cst_5 : f32 to vector<10x128xf32>
    %19 = arith.maximumf %17, %18 : vector<10x128xf32>
    %cst_6 = arith.constant dense<0.000000e+00> : vector<10x128xf32>
    %20 = tpu.matmul %4, %19, %cst_6 {dimension_numbers = #tpu.dot_dimension_numbers<[1], [0], [0], [1], [0, 0, 1, 1], [], []>} : vector<10x10xf32>, vector<10x128xf32>, vector<10x128xf32> -> vector<10x128xf32>
    %21 = vector.broadcast %8 : vector<10x1xf32> to vector<10x128xf32>
    %22 = arith.addf %20, %21 : vector<10x128xf32>
    %cst_7 = arith.constant 0.000000e+00 : f32
    %23 = vector.broadcast %cst_7 : f32 to vector<10x128xf32>
    %24 = arith.maximumf %22, %23 : vector<10x128xf32>
    %25 = vector.broadcast %5 : vector<10x1xf32> to vector<10x128xf32>
    %26 = arith.mulf %24, %25 : vector<10x128xf32>
    %cst_8 = arith.constant dense<0.000000e+00> : vector<128xf32>
    %27 = vector.multi_reduction <add>, %26, %cst_8 [0] : vector<10x128xf32> to vector<128xf32>
    %28 = vector.shape_cast %27 : vector<128xf32> to vector<1x128xf32>
    %29 = vector.broadcast %9 : vector<1x1xf32> to vector<1x128xf32>
    %30 = arith.addf %28, %29 : vector<1x128xf32>
    %c0_9 = arith.constant 0 : index
    %c0_10 = arith.constant 0 : index
    %31 = vector.load %arg3[%c0_9, %c0_10] : memref<1x128xf32, #tpu.memory_space<vmem>>, vector<1x128xf32>
    tpu.vector_store %arg3[%c0_9, %c0_10], %30 {strides = array<i32>} : memref<1x128xf32, #tpu.memory_space<vmem>>, vector<1x128xf32>,
    return
  }
  func.func @transform_0(%arg0: i32) -> (i32, i32) {
    %c0_i32 = arith.constant 0 : i32
    %c0_i32_0 = arith.constant 0 : i32
    return %arg0, %c0_i32 : i32, i32
  }
  func.func @transform_1(%arg0: i32) -> (i32, i32) {
    %c0_i32 = arith.constant 0 : i32
    %c0_i32_0 = arith.constant 0 : i32
    %c0_i32_1 = arith.constant 0 : i32
    return %c0_i32, %c0_i32_0 : i32, i32
  }
  func.func @transform_2(%arg0: i32) -> (i32, i32) {
    %c0_i32 = arith.constant 0 : i32
    %c0_i32_0 = arith.constant 0 : i32
    return %c0_i32, %arg0 : i32, i32
  }
}

</mosaic_0001>

<bundles_post_ra>
// kernel: tpu_custom_call.1
= control target key start
LH: loop header
LB: loop body
LE: loop exit
PB: predicated region body
PF: predicated region fallthrough
CT: control target
= control target key end

     0   :  { %7 = vsyncpa [#allocation3], 0  ;;  %s1110_s0 = inlined_call_operand.vmem [shape: f32[256,32], index: 0, kind: input, shape index: {}]   ;;  %s1111_s1 = inlined_call_operand.vmem [shape: f32[64,128], index: 1, kind: input, shape index: {}]   ;;  %s1112_s2 = inlined_call_operand.hbm [shape: f32[1,256], index: 2, kind: output, shape index: {}]  }
   0x1   :  { %9 = vsyncpa [#allocation3 + $0x1], 0  ;;  %s898_s9 = smov 0   ;;  %s900_s10 = smov 0  }
   0x2   :  { %s902_s11 = smov 0   ;;  %s904_s12 = smov 0  }
   0x3 LB: > { %s590_s13 = sadd.s32 4294967295, %s874_s12   ;;  %s591_s14 = sadd.s32 4294967294, %s874_s12   ;;  %s874_s12 = sphi %s904_s12, %s1122_s12   ;;  %s870_s11 = sphi %s902_s11, %s1121_s11   ;;  %s866_s10 = sphi %s900_s10, %s1120_s10   ;;  %s862_s9 = sphi %s898_s9, %s1119_s9  }
   0x4   : > { %s921_s15 = sadd.s32 1, %s874_s12   ;;  %s69_s16 = sadd.s32 1, %s870_s11 }
   0x5   : > { %s66_s17 = ssub.s32 %s874_s12, %s921_s15  ;;  %p79_p0 = scmp.ne.s32.totalorder %s870_s11, %s866_s10 }
   0x6   : > { %p67_p1 = scmp.eq.s32.totalorder %s66_s17, 0  ;;  %p80_p2 = scmp.eq.s32.totalorder %s590_s13, 1 }
   0x7   : > { %p85_p3 = scmp.ne.s32.totalorder %s866_s10, %s862_s9  ;;  %p86_p4 = scmp.eq.s32.totalorder %s591_s14, 1 }
   0x8   : > { %s931_s18 = scalar_select %p67_p1, %s870_s11, %s69_s16  }
   0x9   : > { %p933_p5 = por %p80_p2, %p79_p0  ;;  %p937_p6 = por %p86_p4, %p85_p3 }
   0xa   : > { %p594_p7 = scmp.ge.s32.totalorder %s874_s12, 1  ;;  %p116_p8 = scmp.lt.s32.totalorder %s874_s12, 3 }
   0xc   : > { %p117_p9 = pnand %p594_p7, %p116_p8 }
   0xd   : > { %s943_s21 = sshll.u32 (!%p117_p9), %s590_s13, 4  ;;  %vm177_vm0 = vcmask (!%p117_p9), 261120   ;;  %v159_v0 = vld [vmem:[%s1111_s1] sm:$0xff] (!%p117_p9)  ;;  %v951_v1 = vld [vmem:[%s1111_s1 + $0x30] sm:$0xff] (!%p117_p9)  ;;  %v876_v2 = vmov (!%p117_p9), 1   ;;  %v960_v3 = vld [vmem:[%s1111_s1 + $0x38] sm:$0xff] (!%p117_p9) }
   0xe   : > { %120 = sbr.rel (%p117_p9) target bundleno = 787 (0x313), region = 28  ;;  %p138_p10 = scmp.lt.s32.totalorder (!%p117_p9), %s943_s21, 31  ;;  %682 = vmatprep.mubr.msk.f32.mxu0 (!%p117_p9), %vm177_vm0, %v159_v0  ;;  %804 = vset.pattern.permute.xlu0 (!%p117_p9), %v876_v2  ;;  %vm969_vm1 = vmpackc.low (!%p117_p9), %vm177_vm0, %vm177_vm0  ;;  %v160_v29 = vld [vmem:[%s1111_s1 + $0x8] sm:$0xff] (!%p117_p9)  ;;  %v161_v30 = vld [vmem:[%s1111_s1 + $0x10] sm:$0xff] (!%p117_p9)  ;;  %vm317_vm2 = vcmask (!%p117_p9), 80896   ;;  %v877_v31 = vmov (!%p117_p9), 2  }
   0xf   : > { %169 = vperm.xlu0 (!%p117_p9), %804, %v951_v1   ;;  %689 = vmatprep.mubr.msk.f32.mxu1 (!%p117_p9), %vm317_vm2, %v161_v30  ;;  %vm324_vm3 = vcmask (!%p117_p9), 1041408   ;;  %vm878_vm4 = vmmov (!%p117_p9), 1   ;;  %v162_v42 = vld [vmem:[%s1111_s1 + $0x18] sm:$0xff] (!%p117_p9)  ;;  %v163_v43 = vld [vmem:[%s1111_s1 + $0x20] sm:$0xff] (!%p117_p9)  ;;  %v879_v44 = vmov (!%p117_p9), 3   ;;  %v880_v45 = vmov (!%p117_p9), 0  }
  0x10   : > { %805 = vset.pattern.permute.xlu1 (!%p117_p9), %v877_v31  ;;  %vm1033_vm5 = vmpackc.low (!%p117_p9), %vm324_vm3, %vm878_vm4  ;;  %v881_v46 = vmov (!%p117_p9), 4   ;;  %v164_v56 = vld [vmem:[%s1111_s1 + $0x28] sm:$0xff] (!%p117_p9)  ;;  %s135_s24 = sand.u32 (!%p117_p9), 1, %s866_s10  }
  0x11   : > { %310 = vperm.xlu1 (!%p117_p9), %805, %v951_v1   ;;  %s136_s25 = scalar_lea.vmem (!%p117_p9), [#allocation2], %s135_s24  ;;  %s524_s30 = scalar_lea.sflag (!%p117_p9), [#allocation3], %s135_s24 }
  0x13   : > { %174 = vperm.xlu0 (!%p117_p9), %804, %v960_v3  }
  0x15   : > { %s139_s26 = scalar_select %p138_p10, %s943_s21, 31  ;;  %314 = vperm.xlu1 %805, %v960_v3  }
  0x17   : > { %s596_s29 = sshll.u32 %s139_s26, 3  ;;  %806 = vset.pattern.permute.xlu0 %v879_v44  ;;  %s536_s26 = sshll.u32 %s136_s25, 4  ;;  %s1070_s26 = int_to_ptr.vmem [resolvable:$true] %s536_s26 }
  0x18   : > { %s965_s4 = scalar_lea.vmem %s1110_s0, %s596_s29  ;;  %410 = vperm.xlu0 %806, %v960_v3   ;;  %s1068_s29 = scalar_lea.hbm %s1112_s2, %s943_s21 }
  0x19   : > { %v143_v5 = vld [vmem:[%s965_s4] sm:$0xff]  ;;  %v144_v6 = vld [vmem:[%s965_s4 + $0x8] sm:$0xff]  ;;  %v145_v7 = vld [vmem:[%s965_s4 + $0x10] sm:$0xff]  ;;  %807 = vset.pattern.permute.xlu1 %v879_v44  ;;  %s812_s3 = scalar_lea.vmem %s1070_s26, 16 }
  0x1a   : > { %v699_v8 = vpack.c.bf16 %v144_v6, %v143_v5  ;;  %v146_v9 = vld [vmem:[%s965_s4 + $0x18] sm:$0xff]  ;;  %v147_v11 = vld [vmem:[%s965_s4 + $0x20] sm:$0xff]  ;;  %v148_v12 = vld [vmem:[%s965_s4 + $0x28] sm:$0xff]  ;;  %406 = vperm.xlu1 %807, %v951_v1   ;;  %p813_p11 = scmp.ne.s32.totalorder %s1070_s26, %s812_s3 }
  0x1b   : > { %v705_v10 = vpack.c.bf16 %v146_v9, %v145_v7  ;;  %v711_v13 = vpack.c.bf16 %v148_v12, %v147_v11  ;;  %v149_v14 = vld [vmem:[%s965_s4 + $0x30] sm:$0xff]  ;;  %v150_v15 = vld [vmem:[%s965_s4 + $0x38] sm:$0xff]  ;;  %v151_v17 = vld [vmem:[%s965_s4 + $0x40] sm:$0xff] }
  0x1c   : > { %701 = vmatprep.subr.msk.bf16.mxu0 %vm969_vm1, %v699_v8  ;;  %v717_v16 = vpack.c.bf16 %v150_v15, %v149_v14  ;;  %v152_v18 = vld [vmem:[%s965_s4 + $0x48] sm:$0xff]  ;;  %v153_v20 = vld [vmem:[%s965_s4 + $0x50] sm:$0xff]  ;;  %v154_v21 = vld [vmem:[%s965_s4 + $0x58] sm:$0xff]  ;;  %809 = vset.pattern.permute.xlu0 %v880_v45  ;;  %p814_p12 = pnand %p813_p11, %p933_p5 }
  0x1d   : > { %704 = vmatpush3.bf16.xpose.msk.msra.mxu0 %vm969_vm1, %v699_v8  ;;  %v723_v19 = vpack.c.bf16 %v152_v18, %v151_v17  ;;  %v729_v22 = vpack.c.bf16 %v154_v21, %v153_v20  ;;  %v155_v23 = vld [vmem:[%s965_s4 + $0x60] sm:$0xff]  ;;  %v156_v24 = vld [vmem:[%s965_s4 + $0x68] sm:$0xff]  ;;  %v157_v26 = vld [vmem:[%s965_s4 + $0x70] sm:$0xff]  ;;  %500 = vperm.xlu0 %809, %v951_v1  }
  0x1e   : > { %707 = vmatprep.subr.msk.bf16.mxu0 %vm969_vm1, %v705_v10  ;;  %v735_v25 = vpack.c.bf16 %v156_v24, %v155_v23  ;;  %v158_v27 = vld [vmem:[%s965_s4 + $0x78] sm:$0xff]  ;;  %808 = vset.pattern.permute.xlu1 %v880_v45  ;;  %p815_p13 = pneg %p814_p12  ;;  %s882_s4 = smov [#allocation2]  }
  0x1f   : > { %v741_v28 = vpack.c.bf16 %v158_v27, %v157_v26  ;;  %504 = vperm.xlu1 %808, %v960_v3   ;;  %s816_s5 = sshll.u32 %s882_s4, 4  ;;  %s817_s5 = int_to_ptr.vmem [resolvable:$false] %s816_s5 }
  0x20   : > { %s818_s6 = scalar_lea.vmem %s817_s5, 32  ;;  %p819_p0 = scmp.lt.s32.totalorder %s1070_s26, %s817_s5 }
  0x21   : > { %811 = vset.pattern.permute.xlu0 %v881_v46  ;;  %p820_p1 = scmp.lt.s32.totalorder %s818_s6, %s812_s3 }
  0x23   : > { %810 = vset.pattern.permute.xlu1 %v881_v46  ;;  %p821_p2 = por %p820_p1, %p819_p0 }
  0x24   : > { %518 = vperm.xlu1 %810, %v951_v1  }
  0x25   : > { %710 = vmatpush3.bf16.xpose.msk.msra.mxu0 %vm969_vm1, %v705_v10  ;;  %p822_p3 = pnand %p821_p2, %p815_p13 }
  0x26   : > { %713 = vmatprep.subr.msk.bf16.mxu0 %vm969_vm1, %v711_v13 }
  0x2d   : > { %716 = vmatpush3.bf16.xpose.msk.msra.mxu0 %vm969_vm1, %v711_v13 }
  0x2e   : > { %719 = vmatprep.subr.msk.bf16.mxu0 %vm969_vm1, %v717_v16 }
  0x35   : > { %722 = vmatpush3.bf16.xpose.msk.msra.mxu0 %vm969_vm1, %v717_v16 }
  0x36   : > { %725 = vmatprep.subr.msk.bf16.mxu0 %vm969_vm1, %v723_v19 }
  0x3d   : > { %728 = vmatpush3.bf16.xpose.msk.msra.mxu0 %vm969_vm1, %v723_v19 }
  0x3e   : > { %731 = vmatprep.subr.msk.bf16.mxu0 %vm969_vm1, %v729_v22 }
  0x45   : > { %734 = vmatpush3.bf16.xpose.msk.msra.mxu0 %vm969_vm1, %v729_v22 }
  0x46   : > { %737 = vmatprep.subr.msk.bf16.mxu0 %vm969_vm1, %v735_v25 }
  0x4d   : > { %740 = vmatpush3.bf16.xpose.msk.msra.mxu0 %vm969_vm1, %v735_v25 }
  0x4e   : > { %743 = vmatprep.subr.msk.bf16.mxu0 %vm969_vm1, %v741_v28 }
  0x55   : > { %746 = vmatpush3.bf16.xpose.msk.msra.mxu0 %vm969_vm1, %v741_v28 }
  0x5c   : > { %683 = vmatmul.mubr.msk.f32.vlgmr.msra.gmra.mrb[0].mxu0 %vm177_vm0, %v160_v29 }
  0x8e   : > { %v170_v32 = vpop.permute.xlu0 %169 }
  0x90   : > { %v311_v47 = vpop.permute.xlu1 %310 }
  0x92   : > { %v175_v33 = vpop.permute.xlu0 %174 }
  0x94   : > { %v315_v48 = vpop.permute.xlu1 %314 }
  0x97   : > { %v411_v58 = vpop.permute.xlu0 %410 }
  0x99   : > { %v407_v57 = vpop.permute.xlu1 %406 }
  0x9c   : > { %v501_v1 = vpop.permute.xlu0 %500 }
  0x9e   : > { %v505_v63 = vpop.permute.xlu1 %504 }
  0xa3   : > { %v519_v12 = vpop.permute.xlu1 %518 }
 0x12f   : > { %v684_v34 = vpop.f32.mrb[0].mxu0 }
 0x130   : > { %v304_v35 = vadd.f32 %v684_v34, %v175_v33  ;;  %v298_v36 = vpop.f32.mrb[1].mxu0 }
 0x131   : > { %v299_v37 = vadd.f32 %v298_v36, %v170_v32 }
 0x132   : > { %v308_v38 = vmax.f32 %v304_v35, 0.0 }
 0x133   : > { %v307_v39 = vmax.f32 %v299_v37, 0.0 }
 0x135   : > { %v747_v41 = vpack.c.bf16 %v308_v38, %v307_v39 }
 0x137   : > { %749 = vmatprep.subr.msk.bf16.mxu1 %vm1033_vm5, %v747_v41 }
 0x138   : > { %752 = vmatpush3.bf16.msk.msra.mxu1 %vm1033_vm5, %v747_v41 }
 0x13b   : > { %690 = vmatmul.mubr.msk.f32.vlgmr.msra.gmra.mrb[0].mxu1 %vm317_vm2, %v162_v42 }
 0x13c   : > { %696 = vmatprep.mubr.msk.f32.mxu1 %vm317_vm2, %v163_v43 }
 0x20e   : > { %v691_v49 = vpop.f32.mrb[0].mxu1 }
 0x20f   : > { %v400_v50 = vadd.f32 %v691_v49, %v315_v48  ;;  %v394_v51 = vpop.f32.mrb[1].mxu1 }
 0x210   : > { %v395_v52 = vadd.f32 %v394_v51, %v311_v47 }
 0x211   : > { %v404_v53 = vmax.f32 %v400_v50, 0.0 }
 0x212   : > { %v403_v54 = vmax.f32 %v395_v52, 0.0 }
 0x214   : > { %v753_v55 = vpack.c.bf16 %v404_v53, %v403_v54 }
 0x216   : > { %755 = vmatprep.subr.msk.bf16.mxu1 %vm1033_vm5, %v753_v55 }
 0x217   : > { %758 = vmatpush3.bf16.msk.msra.mxu1 %vm1033_vm5, %v753_v55 }
 0x21a   : > { %697 = vmatmul.mubr.msk.f32.vlgmr.msra.gmra.mrb[2].mxu1 %vm317_vm2, %v164_v56 }
 0x2ed   : > { %v698_v59 = vpop.f32.mrb[2].mxu1 }
 0x2ee   : > { %v494_v60 = vadd.f32 %v698_v59, %v411_v58  ;;  %v488_v61 = vpop.f32.mrb[3].mxu1 }
 0x2ef   : > { %v489_v62 = vadd.f32 %v488_v61, %v407_v57 }
 0x2f0   : > { %v498_v0 = vmax.f32 %v494_v60, 0.0 }
 0x2f1   : > { %v497_v2 = vmax.f32 %v489_v62, 0.0 }
 0x2f2   : > { %v508_v3 = vmul.f32 %v505_v63, %v498_v0 }
 0x2f3   : > { %v507_v4 = vmul.f32 %v501_v1, %v497_v2 }
 0x2f4   : > { %v509_v5 = vsel %vm324_vm3, %v508_v3, 0.0 }
 0x2f5   : > { %v510_v6 = vadd.f32 %v509_v5, %v507_v4 }
 0x2f7   : > { %v511_v7 = vrot.slane %v510_v6, 4 }
 0x2f9   : > { %v512_v8 = vadd.f32 %v511_v7, %v510_v6 }
 0x2fb   : > { %v513_v9 = vrot.slane %v512_v8, 2 }
 0x2fd   : > { %v514_v10 = vadd.f32 %v513_v9, %v512_v8 }
 0x2ff   : > { %v515_v11 = vrot.slane %v514_v10, 1 }
 0x301   : > { %v516_v13 = vadd.f32 %v515_v11, %v514_v10 }
 0x303   : > { %v521_v14 = vadd.f32 %v519_v12, %v516_v13 }
 0x305   : > { %522 = vst [vmem:[%s136_s25] sm:$0x1] %v521_v14 }
 0x306   : > { %825 = shalt.err (!%p822_p3)
}
 0x307   : > { %s826_s21 = scalar_lea.hbm %s1068_s29, 16  ;;  %s830_s13 = scalar_lea.hbm %s1112_s2, 32 }
 0x308   : > { %p827_p4 = scmp.ne.s32.totalorder %s1068_s29, %s826_s21  ;;  %p831_p9 = scmp.lt.u32.totalorder %s1068_s29, %s1112_s2 }
 0x309   : > { %p832_p10 = scmp.lt.u32.totalorder %s830_s13, %s826_s21  ;;  %p834_p12 = scmp.lt.u32.totalorder %s826_s21, %s1068_s29 }
 0x30a   : > { %p828_p7 = pnand %p827_p4, %p933_p5 }
 0x30b   : > { %p833_p11 = por %p832_p10, %p831_p9 }
 0x30c   : > { %p829_p8 = pneg %p828_p7 }
 0x30d   : > { %p835_p13 = por %p834_p12, %p833_p11 }
 0x30f   : > { %p836_p0 = pnand %p835_p13, %p829_p8 }
 0x311   : > { %839 = shalt.err (!%p836_p0)
}
 0x312   : > { %759 = dma.vmem_to_hbm [thread:$0]  (%p933_p5), %s1070_s26, 16, %s1068_s29, %s524_s30  }
 0x313 PF: > { %p765_p1 = scmp.ge.s32.totalorder %s874_s12, 2  ;;  %s548_s17 = sand.u32 1, %s862_s9  }
 0x314   : > { %s549_s22 = scalar_lea.sflag [#allocation3], %s548_s17 }
 0x315   : > { %p762_p2 = pnand %p765_p1, %p937_p6 }
 0x317   : > { %857 = dma.done.wait (!%p762_p2), %s549_s22, 16  }
 0x318   : > { %859 = vsyncadd (!%p762_p2), %s549_s22, 4294967280  ;;  %p12_p3 = scmp.ge.s32.totalorder %s921_s15, 4   ;;  %s1119_s9 = smov %s866_s10 }
 0x319   : > { %s1120_s10 = smov %s870_s11  ;;  %s1121_s11 = smov %s931_s18 }
 0x31a   : > { %s1122_s12 = smov %s921_s15  ;;  %14 = sbr.rel (!%p12_p3) target bundleno = 3 (0x3), region = 63 }
 0x321   :  { %553 = vsyncpa [#allocation3], 1 }
 0x322   :  { %555 = vsyncpa [#allocation3 + $0x1], 1 }

</bundles_post_ra>
